<compile_context>
chip_gen: v7x
topology: tpu7x:2x2x1
jax: 0.10.0
libtpu: 0.0.40
codegen_flags: <defaults>
</compile_context>

<pallas_src>
import jax
import jax.numpy as jnp
import numpy as np
from jax.experimental import pallas as pl
from jax.experimental.pallas import tpu as pltpu


def _round_down(v: int, m: int) -> int:
    return (v // m) * m


def _biased_obs_kernel(x_ref, svw_ref, o_ref):
    """One batch tile.

    x_ref  : VMEM (8, Bt)      -- state vectors, one per lane (column-major batch)
    svw_ref: VMEM (n_pad, 4)   -- fused constant [svx, svy, svz, W], sats on sublanes
    o_ref  : VMEM (n_pad, Bt)  -- predicted measurements (satellite x batch)
    """
    # Per-batch state components as (1, Bt) lane vectors (static ref slices).
    px = x_ref[0:1, :]
    py = x_ref[2:3, :]
    pz = x_ref[4:5, :]
    clk = x_ref[6:7, :]

    # Per-satellite coordinates / bias as (n_pad, 1) sublane vectors.
    svx = svw_ref[:, 0:1]
    svy = svw_ref[:, 1:2]
    svz = svw_ref[:, 2:3]
    w = svw_ref[:, 3:4]

    dx = px - svx                                   # (n_pad, Bt) via broadcast
    dy = py - svy
    dz = pz - svz
    rng = jnp.sqrt(dx * dx + dy * dy + dz * dz)     # Euclidean range; sqrt -> EUP slot
    o_ref[...] = rng + clk + w


def biased_observation_model_batched(x_cols: jax.Array,
                                     sv_pos: jax.Array,
                                     w: jax.Array,
                                     *, block_b: int = 32768) -> jax.Array:
    """Batched forward.

    x_cols : (8, B)  state vectors stored column-major (one state per lane).
             NOTE: if upstream data is (B, 8), fuse the transpose into the
             producer; a standalone transpose doubles HBM traffic for this
             memory-bound kernel.
    sv_pos : (n, 3)  satellite positions.
    w      : (n,) or (n, 1)  W parameter (one entry per measurement).
    returns: (n, B)  predicted measurements, satellites on rows, batch on lanes.
    """
    n = sv_pos.shape[0]
    dim_state, B = x_cols.shape
    assert dim_state == 8, "state vector must have 8 components"
    w_col = jnp.asarray(w, jnp.float32).reshape(n, 1)

    # --- fuse constants and pad satellite count to a multiple of 8 (sublanes) ---
    svw = jnp.concatenate([sv_pos.astype(jnp.float32), w_col], axis=1)   # (n, 4)
    n_pad = ((n + 7) // 8) * 8
    if n_pad != n:
        svw = jnp.pad(svw, ((0, n_pad - n), (0, 0)))                     # rows sliced off later

    # --- batch tile selection: always a multiple of 128, grid = cdiv, pad B ---
    b_lane = max(128, ((B + 127) // 128) * 128)            # lane-align the batch
    bt = max(128, min(_round_down(max(block_b, 128), 128), b_lane))
    if b_lane >= 256:
        # Keep >= 2 grid steps so dimension_semantics=("parallel",) can shard
        # the batch across v7x's two TensorCores (harmless on v5e/v6e).
        bt = min(bt, max(128, _round_down((b_lane + 1) // 2, 128)))
    grid_b = pl.cdiv(b_lane, bt)
    b_full = grid_b * bt

    x_in = x_cols.astype(jnp.float32)
    if b_full != B:
        x_in = jnp.pad(x_in, ((0, 0), (0, b_full - B)))     # padded lanes sliced off later

    out = pl.pallas_call(
        _biased_obs_kernel,
        out_shape=jax.ShapeDtypeStruct((n_pad, b_full), jnp.float32),
        grid=(grid_b,),
        in_specs=[
            pl.BlockSpec((8, bt), lambda b: (0, b)),        # states, batch tile on lanes
            pl.BlockSpec((n_pad, 4), lambda b: (0, 0)),     # fused [sv_pos | W], resident
        ],
        out_specs=pl.BlockSpec((n_pad, bt), lambda b: (0, b)),
        compiler_params=pltpu.CompilerParams(
            dimension_semantics=("parallel",)),             # v7x: both TCs split the batch
    )(x_in, svw)

    return out[:n, :B]


def biased_observation_model(x: jax.Array, sv_pos: jax.Array, W: jax.Array) -> jax.Array:
    """Original module semantics: x (8,), sv_pos (n, 3), W (n,) -> (n,)."""
    n = sv_pos.shape[0]
    assert W.shape == (n,), "W broadcast requires n == dim_measurement (as in the PyTorch model)"
    out = biased_observation_model_batched(x.reshape(8, 1), sv_pos, W)
    return out.reshape(n)


def _reference_single(x, sv_pos, W):
    pos = x[jnp.array([0, 2, 4])]
    rng = jnp.linalg.norm(pos[None, :] - sv_pos, axis=1)
    return rng + x[6] + W


if __name__ == "__main__":
    key = jax.random.PRNGKey(0)
    k1, k2, k3, k4 = jax.random.split(key, 4)

    # --- case 1: module defaults (dim_measurement = n = 8), batched over B=512 ---
    n_sv = 8
    B = 512
    x_cols = jax.random.normal(k1, (8, B), dtype=jnp.float32) * 100.0
    sv_pos = jax.random.normal(k2, (n_sv, 3), dtype=jnp.float32) * 1000.0
    w_vec = jnp.zeros((n_sv,), dtype=jnp.float32)            # nn.Parameter init (zeros)

    out_b = biased_observation_model_batched(x_cols, sv_pos, w_vec)
    jax.block_until_ready(out_b)
    ref_b = jax.vmap(lambda xs: _reference_single(xs, sv_pos, w_vec))(x_cols.T).T
    assert out_b.shape == (n_sv, B)
    assert np.allclose(np.asarray(out_b), np.asarray(ref_b), rtol=1e-5, atol=1e-3)

    # --- case 2: ragged shapes (n=12 not a multiple of 8, B=300 not a multiple of 128) ---
    n_sv2, B2 = 12, 300
    x_cols2 = jax.random.normal(k3, (8, B2), dtype=jnp.float32) * 100.0
    sv_pos2 = jax.random.normal(k4, (n_sv2, 3), dtype=jnp.float32) * 1000.0
    w_vec2 = jnp.zeros((n_sv2,), dtype=jnp.float32)

    out_b2 = biased_observation_model_batched(x_cols2, sv_pos2, w_vec2)
    jax.block_until_ready(out_b2)
    ref_b2 = jax.vmap(lambda xs: _reference_single(xs, sv_pos2, w_vec2))(x_cols2.T).T
    assert out_b2.shape == (n_sv2, B2)
    assert np.allclose(np.asarray(out_b2), np.asarray(ref_b2), rtol=1e-5, atol=1e-3)

    # --- case 3: original single-state forward (spec interface) ---
    x0 = x_cols[:, 0]
    out_s = biased_observation_model(x0, sv_pos, w_vec)
    jax.block_until_ready(out_s)
    ref_s = _reference_single(x0, sv_pos, w_vec)
    assert out_s.shape == (n_sv,)
    assert np.allclose(np.asarray(out_s), np.asarray(ref_s), rtol=1e-5, atol=1e-3)

    print("KERNEL_OK")
</pallas_src>

<mosaic_0001>
module attributes {stable_mosaic.version = 11 : i64} {
  func.func @_biased_obs_kernel(%arg0: i32, %arg1: memref<8x256xf32, #tpu.memory_space<vmem>>, %arg2: memref<8x4xf32, #tpu.memory_space<vmem>>, %arg3: memref<8x256xf32, #tpu.memory_space<vmem>>) attributes {dimension_semantics = [#tpu.dimension_semantics<parallel>], iteration_bounds = array<i64: 2>, scalar_prefetch = 0 : i64, scratch_operands = 0 : i64, tpu.core_type = #tpu.core_type<tc>, window_params = [{transform_indices = @transform_0, window_bounds = array<i64: 8, 256>}, {pipeline_mode = #tpu.pipeline_mode<synchronous>, transform_indices = @transform_1, window_bounds = array<i64: 8, 4>}, {transform_indices = @transform_2, window_bounds = array<i64: 8, 256>}]} {
    %c0 = arith.constant 0 : index
    %c0_0 = arith.constant 0 : index
    %0 = vector.load %arg1[%c0, %c0_0] : memref<8x256xf32, #tpu.memory_space<vmem>>, vector<1x256xf32>
    %c2 = arith.constant 2 : index
    %c0_1 = arith.constant 0 : index
    %1 = vector.load %arg1[%c2, %c0_1] : memref<8x256xf32, #tpu.memory_space<vmem>>, vector<1x256xf32>
    %c4 = arith.constant 4 : index
    %c0_2 = arith.constant 0 : index
    %2 = vector.load %arg1[%c4, %c0_2] : memref<8x256xf32, #tpu.memory_space<vmem>>, vector<1x256xf32>
    %c6 = arith.constant 6 : index
    %c0_3 = arith.constant 0 : index
    %3 = vector.load %arg1[%c6, %c0_3] : memref<8x256xf32, #tpu.memory_space<vmem>>, vector<1x256xf32>
    %c0_4 = arith.constant 0 : index
    %c0_5 = arith.constant 0 : index
    %4 = vector.load %arg2[%c0_4, %c0_5] : memref<8x4xf32, #tpu.memory_space<vmem>>, vector<8x1xf32>
    %c0_6 = arith.constant 0 : index
    %c1 = arith.constant 1 : index
    %5 = vector.load %arg2[%c0_6, %c1] : memref<8x4xf32, #tpu.memory_space<vmem>>, vector<8x1xf32>
    %c0_7 = arith.constant 0 : index
    %c2_8 = arith.constant 2 : index
    %6 = vector.load %arg2[%c0_7, %c2_8] : memref<8x4xf32, #tpu.memory_space<vmem>>, vector<8x1xf32>
    %c0_9 = arith.constant 0 : index
    %c3 = arith.constant 3 : index
    %7 = vector.load %arg2[%c0_9, %c3] : memref<8x4xf32, #tpu.memory_space<vmem>>, vector<8x1xf32>
    %8 = vector.broadcast %0 : vector<1x256xf32> to vector<8x256xf32>
    %9 = vector.broadcast %4 : vector<8x1xf32> to vector<8x256xf32>
    %10 = arith.subf %8, %9 : vector<8x256xf32>
    %11 = vector.broadcast %1 : vector<1x256xf32> to vector<8x256xf32>
    %12 = vector.broadcast %5 : vector<8x1xf32> to vector<8x256xf32>
    %13 = arith.subf %11, %12 : vector<8x256xf32>
    %14 = vector.broadcast %2 : vector<1x256xf32> to vector<8x256xf32>
    %15 = vector.broadcast %6 : vector<8x1xf32> to vector<8x256xf32>
    %16 = arith.subf %14, %15 : vector<8x256xf32>
    %17 = arith.mulf %10, %10 : vector<8x256xf32>
    %18 = arith.mulf %13, %13 : vector<8x256xf32>
    %19 = arith.addf %17, %18 : vector<8x256xf32>
    %20 = arith.mulf %16, %16 : vector<8x256xf32>
    %21 = arith.addf %19, %20 : vector<8x256xf32>
    %22 = math.sqrt %21 : vector<8x256xf32>
    %23 = vector.broadcast %3 : vector<1x256xf32> to vector<8x256xf32>
    %24 = arith.addf %22, %23 : vector<8x256xf32>
    %25 = vector.broadcast %7 : vector<8x1xf32> to vector<8x256xf32>
    %26 = arith.addf %24, %25 : vector<8x256xf32>
    %c0_10 = arith.constant 0 : index
    %c0_11 = arith.constant 0 : index
    %27 = vector.load %arg3[%c0_10, %c0_11] : memref<8x256xf32, #tpu.memory_space<vmem>>, vector<8x256xf32>
    tpu.vector_store %arg3[%c0_10, %c0_11], %26 {strides = array<i32>} : memref<8x256xf32, #tpu.memory_space<vmem>>, vector<8x256xf32>,
    return
  }
  func.func @transform_0(%arg0: i32) -> (i32, i32) {
    %c0_i32 = arith.constant 0 : i32
    %c0_i32_0 = arith.constant 0 : i32
    return %c0_i32, %arg0 : i32, i32
  }
  func.func @transform_1(%arg0: i32) -> (i32, i32) {
    %c0_i32 = arith.constant 0 : i32
    %c0_i32_0 = arith.constant 0 : i32
    %c0_i32_1 = arith.constant 0 : i32
    return %c0_i32, %c0_i32_0 : i32, i32
  }
  func.func @transform_2(%arg0: i32) -> (i32, i32) {
    %c0_i32 = arith.constant 0 : i32
    %c0_i32_0 = arith.constant 0 : i32
    return %c0_i32, %arg0 : i32, i32
  }
}

</mosaic_0001>

<bundles_post_ra>
// kernel: tpu_custom_call.1
= control target key start
LH: loop header
LB: loop body
LE: loop exit
PB: predicated region body
PF: predicated region fallthrough
CT: control target
= control target key end

     0   :  { %7 = vsyncpa [#allocation3], 0  ;;  %s723_s0 = inlined_call_operand.hbm [shape: f32[8,512], index: 0, kind: input, shape index: {}]   ;;  %s724_s1 = inlined_call_operand.vmem [shape: f32[8,4], index: 1, kind: input, shape index: {}]   ;;  %s725_s2 = inlined_call_operand.hbm [shape: f32[8,512], index: 2, kind: output, shape index: {}]  }
   0x1   :  { %9 = vsyncpa [#allocation3 + $0x1], 0 }
   0x2   :  { %10 = vsyncpa [#allocation4], 0 }
   0x3   :  { %12 = vsyncpa [#allocation4 + $0x1], 0  ;;  %s549_s9 = smov 0   ;;  %s551_s10 = smov 0  }
   0x4   :  { %s553_s11 = smov 0   ;;  %s555_s12 = smov 0  }
   0x5 LB: > { %s570_s13 = sadd.s32 4294967295, %s526_s12   ;;  %s352_s14 = sadd.s32 4294967294, %s526_s12   ;;  %s526_s12 = sphi %s555_s12, %s740_s12   ;;  %s522_s11 = sphi %s553_s11, %s739_s11   ;;  %s518_s10 = sphi %s551_s10, %s738_s10   ;;  %s514_s9 = sphi %s549_s9, %s737_s9  }
   0x6   : > { %s574_s15 = sadd.s32 1, %s526_s12   ;;  %s25_s16 = sadd.s32 1, %s522_s11 }
   0x7   : > { %s22_s17 = ssub.s32 %s526_s12, %s574_s15  ;;  %p32_p0 = scmp.ne.s32.totalorder %s522_s11, %s518_s10 }
   0x8   : > { %p23_p1 = scmp.eq.s32.totalorder %s22_s17, 0  ;;  %p33_p2 = scmp.eq.s32.totalorder %s526_s12, 0 }
   0x9   : > { %p38_p3 = scmp.ne.s32.totalorder %s518_s10, %s514_s9  ;;  %p39_p4 = scmp.eq.s32.totalorder %s570_s13, 0 }
   0xa   : > { %s586_s18 = scalar_select %p23_p1, %s522_s11, %s25_s16  }
   0xb   : > { %p588_p5 = por %p33_p2, %p32_p0  ;;  %p592_p6 = por %p39_p4, %p38_p3 }
   0xc   : > { %p83_p7 = scmp.eq.s32.totalorder %s570_s13, 1  ;;  %p89_p8 = scmp.eq.s32.totalorder %s352_s14, 1 }
   0xd   : > { %p383_p10 = scmp.lt.s32.totalorder %s526_s12, 2  ;;  %s112_s23 = sand.u32 1, %s522_s11  }
   0xe   : > { %p599_p11 = por %p83_p7, %p32_p0  ;;  %p603_p12 = por %p89_p8, %p38_p3 }
   0xf   : > { %s369_s24 = sshll.u32 %s526_s12, 8  ;;  %s355_s25 = sshll.u32 %s112_s23, 4 }
  0x10   : > { %s729_s21 = scalar_select %p599_p11, 1, 0 }
  0x11   : > { %s730_s22 = scalar_select %p603_p12, 1, 0 }
  0x12   : > { %s612_s28 = scalar_lea.hbm %s723_s0, %s369_s24  ;;  %s116_s29 = scalar_lea.vmem [#allocation2], %s355_s25 }
  0x13   : > { %s124_s30 = sshll.u32 %s116_s29, 4  ;;  %p616_p13 = pnand %p383_p10, %p588_p5  ;;  %s620_s30 = int_to_ptr.vmem [resolvable:$true] %s124_s30 }
  0x14   : > { %s113_s4 = scalar_lea.sflag [#allocation3], %s112_s23  ;;  %s430_s5 = scalar_lea.hbm %s612_s28, 256 }
  0x15   : > { %p431_p2 = scmp.ne.s32.totalorder %s612_s28, %s430_s5  ;;  %p432_p3 = pneg %p616_p13 }
  0x16   : > { %s435_s8 = scalar_lea.hbm %s723_s0, 512  ;;  %p436_p5 = scmp.lt.u32.totalorder %s612_s28, %s723_s0 }
  0x17   : > { %p433_p4 = pnand %p432_p3, %p431_p2  ;;  %p437_p8 = scmp.lt.u32.totalorder %s435_s8, %s430_s5 }
  0x18   : > { %p439_p9 = scmp.lt.u32.totalorder %s430_s5, %s612_s28 }
  0x19   : > { %p434_p7 = pneg %p433_p4  ;;  %p438_p10 = por %p437_p8, %p436_p5 }
  0x1b   : > { %p440_p0 = por %p439_p9, %p438_p10 }
  0x1d   : > { %p441_p1 = pnand %p440_p0, %p434_p7 }
  0x1f   : > { %444 = shalt.err (!%p441_p1)
}
  0x20   : > { %s445_s17 = scalar_lea.vmem %s620_s30, 256  ;;  %s528_s19 = smov [#allocation2]  }
  0x21   : > { %p446_p2 = scmp.ne.s32.totalorder %s620_s30, %s445_s17  ;;  %s450_s23 = sshll.u32 %s528_s19, 4  ;;  %s451_s23 = int_to_ptr.vmem [resolvable:$false] %s450_s23 }
  0x22   : > { %s452_s24 = scalar_lea.vmem %s451_s23, 512  ;;  %p453_p11 = scmp.lt.s32.totalorder %s620_s30, %s451_s23 }
  0x23   : > { %p448_p4 = pnand %p446_p2, %p432_p3  ;;  %p454_p5 = scmp.lt.s32.totalorder %s452_s24, %s445_s17 }
  0x25   : > { %p449_p12 = pneg %p448_p4  ;;  %p455_p8 = por %p454_p5, %p453_p11 }
  0x27   : > { %p456_p9 = pnand %p455_p8, %p449_p12 }
  0x29   : > { %459 = shalt.err (!%p456_p9)
}
  0x2a   : > { %378 = dma.hbm_to_vmem [thread:$0]  (!%p616_p13), %s612_s28, 256, %s620_s30, %s113_s4  }
  0x2b   : > { %p732_p0 = scmp.lt.s32.totalorder %s526_s12, 3  ;;  %p733_p1 = scmp.ge.s32.totalorder %s526_s12, 1 }
  0x2d   : > { %p130_p3 = pnand %p733_p1, %p732_p0 }
  0x2e   : > { %s654_s25 = sand.u32 (!%p130_p3), 1, %s518_s10  }
  0x2f   : > { %133 = sbr.rel (%p130_p3) target bundleno = 232 (0xe8), region = 28  ;;  %s359_s26 = sshll.u32 (!%p130_p3), %s654_s25, 4 }
  0x30   : > { %s136_s27 = scalar_lea.sflag (!%p130_p3), [#allocation3], %s654_s25  ;;  %s660_s29 = scalar_lea.vmem (!%p130_p3), [#allocation2], %s359_s26 }
  0x36   : > { %505 = dma.done.wait (%p592_p6), %s136_s27, 256  }
  0x37   : > { %507 = vsyncadd (%p592_p6), %s136_s27, 4294967040  ;;  %v529_v0 = vmov 0   ;;  %v530_v1 = vmov 2   ;;  %v169_v2 = vld [vmem:[%s724_s1] sm:$0xff]  ;;  %v531_v3 = vmov 1   ;;  %v532_v4 = vmov 3  }
  0x38   : > { %421 = vset.pattern.permute.xlu0 %v529_v0  ;;  %423 = vset.pattern.permute.xlu1 %v530_v1  ;;  %v171_v5 = vlaneseq  ;;  %v162_v9 = vld [vmem:[%s660_s29] ss:$8 sm:$0x3]  ;;  %v362_v10 = vld [vmem:[%s660_s29 + $0x4] ss:$8 sm:$0x3] }
  0x39   : > { %183 = vperm.xlu0 %421, %v169_v2   ;;  %217 = vperm.xlu1 %423, %v169_v2   ;;  %v361_v13 = vld [vmem:[%s660_s29 + $0x2] ss:$8 sm:$0x3]  ;;  %v363_v37 = vld [vmem:[%s660_s29 + $0x6] ss:$8 sm:$0x3] }
  0x3a   : > { %v172_v6 = vshrl.u32 %v171_v5, 7  ;;  %s370_s20 = sshll.u32 %s570_s13, 8  ;;  %s159_s3 = scalar_lea.vmem [#allocation5], %s359_s26 }
  0x3b   : > { %s282_s4 = sshll.u32 %s159_s3, 4  ;;  %s679_s7 = scalar_lea.hbm %s725_s2, %s370_s20  ;;  %s681_s4 = int_to_ptr.vmem [resolvable:$true] %s282_s4 }
  0x3c   : > { %v173_v7 = vsub.s32 0, %v172_v6  ;;  %v177_v8 = vsub.s32 1, %v172_v6  ;;  %s268_s8 = scalar_lea.sflag [#allocation4], %s654_s25  ;;  %s460_s13 = scalar_lea.vmem %s681_s4, 256 }
  0x3d   : > { %422 = vset.pattern.permute.xlu0 %v531_v3  ;;  %424 = vset.pattern.permute.xlu1 %v532_v4  ;;  %p461_p6 = scmp.ne.s32.totalorder %s681_s4, %s460_s13  ;;  %p734_p11 = scmp.ne.s32.totalorder %s729_s21, 0 }
  0x3e   : > { %200 = vperm.xlu0 %422, %v169_v2   ;;  %260 = vperm.xlu1 %424, %v169_v2   ;;  %v174_v11 = vrot.slane %v162_v9, %v173_v7  ;;  %v178_v12 = vrot.slane %v162_v9, %v177_v8  ;;  %v209_v15 = vrot.slane %v362_v10, %v173_v7  ;;  %s533_s14 = smov [#allocation5]  }
  0x3f   : > { %v213_v16 = vrot.slane %v362_v10, %v177_v8  ;;  %v192_v18 = vrot.slane %v361_v13, %v173_v7  ;;  %v196_v19 = vrot.slane %v361_v13, %v177_v8  ;;  %v250_v41 = vrot.slane %v363_v37, %v173_v7  ;;  %p462_p12 = pnand %p461_p6, %p734_p11  ;;  %s464_s16 = sshll.u32 %s533_s14, 4  ;;  %s465_s16 = int_to_ptr.vmem [resolvable:$false] %s464_s16 }
  0x40   : > { %v254_v44 = vrot.slane %v363_v37, %v177_v8  ;;  %s466_s17 = scalar_lea.vmem %s465_s16, 512  ;;  %p467_p7 = scmp.lt.s32.totalorder %s681_s4, %s465_s16 }
  0x41   : > { %p463_p13 = pneg %p462_p12  ;;  %p468_p10 = scmp.lt.s32.totalorder %s466_s17, %s460_s13 }
  0x42   : > { %425 = vset.pattern.permute.xlu0 %v532_v4 }
  0x43   : > { %p469_p2 = por %p468_p10, %p467_p7 }
  0x45   : > { %p470_p4 = pnand %p469_p2, %p463_p13 }
  0xb8   : > { %v184_v14 = vpop.permute.xlu0 %183  ;;  %v218_v17 = vpop.permute.xlu1 %217 }
  0xb9   : > { %v186_v20 = vsub.f32 %v174_v11, %v184_v14  ;;  %v187_v21 = vsub.f32 %v178_v12, %v184_v14  ;;  %v220_v22 = vsub.f32 %v209_v15, %v218_v17  ;;  %v221_v23 = vsub.f32 %v213_v16, %v218_v17 }
  0xbb   : > { %v222_v27 = vmul.f32 %v186_v20, %v186_v20  ;;  %v223_v28 = vmul.f32 %v187_v21, %v187_v21  ;;  %v228_v31 = vmul.f32 %v220_v22, %v220_v22  ;;  %v229_v32 = vmul.f32 %v221_v23, %v221_v23 }
  0xbd   : > { %v201_v24 = vpop.permute.xlu0 %200  ;;  %v261_v47 = vpop.permute.xlu1 %260 }
  0xbe   : > { %v203_v25 = vsub.f32 %v192_v18, %v201_v24  ;;  %v204_v26 = vsub.f32 %v196_v19, %v201_v24 }
  0xc0   : > { %v224_v29 = vmul.f32 %v203_v25, %v203_v25  ;;  %v225_v30 = vmul.f32 %v204_v26, %v204_v26 }
  0xc2   : > { %v226_v33 = vadd.f32 %v224_v29, %v222_v27  ;;  %v227_v34 = vadd.f32 %v225_v30, %v223_v28 }
  0xc4   : > { %v230_v35 = vadd.f32 %v228_v31, %v226_v33  ;;  %v231_v36 = vadd.f32 %v229_v32, %v227_v34 }
  0xc6   : > { %426 = vrsqrt.f32 %v230_v35  ;;  %vm234_vm0 = vcmp.eq.f32.partialorder %v230_v35, inf  ;;  %v237_v42 = vand.u32 2147483648, %v230_v35  ;;  %vm236_vm1 = vcmp.eq.f32.partialorder %v230_v35, 0.0 }
  0xc7   : > { %428 = vrsqrt.f32 %v231_v36  ;;  %vm241_vm2 = vcmp.eq.f32.partialorder %v231_v36, inf  ;;  %v244_v46 = vand.u32 2147483648, %v231_v36  ;;  %vm243_vm3 = vcmp.eq.f32.partialorder %v231_v36, 0.0 }
  0xd0   : > { %v427_v38 = vpop.eup %426 }
  0xd1   : > { %v429_v39 = vpop.eup %428  ;;  %v233_v40 = vmul.f32 %v427_v38, %v230_v35 }
  0xd2   : > { %v240_v43 = vmul.f32 %v429_v39, %v231_v36 }
  0xd3   : > { %v235_v45 = vsel %vm234_vm0, %v230_v35, %v233_v40 }
  0xd4   : > { %v238_v48 = vsel %vm236_vm1, %v237_v42, %v235_v45  ;;  %v242_v49 = vsel %vm241_vm2, %v231_v36, %v240_v43 }
  0xd5   : > { %v245_v50 = vsel %vm243_vm3, %v244_v46, %v242_v49  ;;  %v257_v51 = vadd.f32 %v250_v41, %v238_v48 }
  0xd6   : > { %v258_v52 = vadd.f32 %v254_v44, %v245_v50 }
  0xd7   : > { %v263_v53 = vadd.f32 %v261_v47, %v257_v51 }
  0xd8   : > { %v264_v54 = vadd.f32 %v261_v47, %v258_v52 }
  0xd9   : > { %265 = vst [vmem:[%s159_s3] sm:$0xff] %v263_v53 }
  0xda   : > { %266 = vst [vmem:[%s159_s3 + $0x8] sm:$0xff] %v264_v54 }
  0xdb   : > { %473 = shalt.err (!%p470_p4)
}
  0xdc   : > { %s474_s19 = scalar_lea.hbm %s679_s7, 256  ;;  %s478_s25 = scalar_lea.hbm %s725_s2, 512 }
  0xdd   : > { %p475_p5 = scmp.ne.s32.totalorder %s679_s7, %s474_s19  ;;  %p479_p0 = scmp.lt.u32.totalorder %s679_s7, %s725_s2 }
  0xde   : > { %p480_p1 = scmp.lt.u32.totalorder %s478_s25, %s474_s19  ;;  %p482_p6 = scmp.lt.u32.totalorder %s474_s19, %s679_s7 }
  0xdf   : > { %p476_p8 = pnand %p475_p5, %p734_p11 }
  0xe0   : > { %p481_p3 = por %p480_p1, %p479_p0 }
  0xe1   : > { %p477_p9 = pneg %p476_p8 }
  0xe2   : > { %p483_p12 = por %p482_p6, %p481_p3 }
  0xe4   : > { %p484_p13 = pnand %p483_p12, %p477_p9 }
  0xe6   : > { %487 = shalt.err (!%p484_p13)
}
  0xe7   : > { %373 = dma.vmem_to_hbm [thread:$0]  (%p734_p11), %s681_s4, 256, %s679_s7, %s268_s8  }
  0xe8 PF: > { %s294_s29 = sand.u32 1, %s514_s9   ;;  %p735_p7 = scmp.ne.s32.totalorder %s730_s22, 0 }
  0xe9   : > { %p736_p10 = scmp.ge.s32.totalorder %s526_s12, 2  ;;  %s295_s28 = scalar_lea.sflag [#allocation4], %s294_s29 }
  0xeb   : > { %p380_p2 = pnand %p736_p10, %p735_p7 }
  0xed   : > { %509 = dma.done.wait (!%p380_p2), %s295_s28, 256  }
  0xee   : > { %511 = vsyncadd (!%p380_p2), %s295_s28, 4294967040  ;;  %p15_p4 = scmp.ge.s32.totalorder %s574_s15, 4   ;;  %s737_s9 = smov %s518_s10 }
  0xef   : > { %s738_s10 = smov %s522_s11  ;;  %s739_s11 = smov %s586_s18 }
  0xf0   : > { %s740_s12 = smov %s574_s15  ;;  %17 = sbr.rel (!%p15_p4) target bundleno = 5 (0x5), region = 76 }
  0xf7   :  { %300 = vsyncpa [#allocation3], 1 }
  0xf8   :  { %302 = vsyncpa [#allocation3 + $0x1], 1 }
  0xf9   :  { %303 = vsyncpa [#allocation4], 1 }
  0xfa   :  { %305 = vsyncpa [#allocation4 + $0x1], 1 }

</bundles_post_ra>
